<compile_context>
chip_gen: v6e
topology: v6e:2x2x1
jax: 0.10.0
libtpu: 0.0.40
codegen_flags: <defaults>
</compile_context>

<pallas_src>
import functools

import jax
import jax.numpy as jnp
from jax.experimental import pallas as pl
from jax.experimental.pallas import tpu as pltpu


def attention_kernel(enc_ref, att2_ref, w_enc_ref, w_full_ref, b_full_ref,
                     awe_ref, alpha_ref, *, matmul_dtype):
    TB, P, E = enc_ref.shape
    A = w_enc_ref.shape[1]
    md = matmul_dtype
    fast = (md == jnp.bfloat16)

    enc = enc_ref[...]                                            # (TB, P, E)

    # encoder_att: one (TB*P, E) x (E, A) MXU matmul for the whole batch tile.
    att1 = jnp.dot(enc.reshape(TB * P, E).astype(md),
                   w_enc_ref[...].astype(md),
                   preferred_element_type=jnp.float32)            # (TB*P, A) f32
    att1 = att1.reshape(TB, P, A)

    # decoder_att (+ both linear biases) was precomputed outside: (TB, A), broadcast
    # over pixels.  Single fused broadcast add + ReLU on the VPU, all f32.
    h = jnp.maximum(att1 + att2_ref[...][:, None, :], 0.0)        # (TB, P, A)

    # full_att then squeeze: contract the attention (lane) axis -> (TB, P), P lane-dense.
    scores = jnp.sum(h * w_full_ref[...], axis=-1) + b_full_ref[0]

    # Softmax over the pixel axis, all in f32 (exp on the EUP).
    m = jnp.max(scores, axis=-1, keepdims=True)                   # (TB, 1)
    e = jnp.exp(scores - m)                                       # (TB, P)
    denom = jnp.sum(e, axis=-1, keepdims=True)                    # (TB, 1)
    # EUP approximate reciprocal in the fast (bf16) path; exact divide in the accurate
    # f32 path to preserve the 1e-5 reference tolerance.
    alpha = e * pl.reciprocal(denom, approx=fast)                 # (TB, P)
    alpha_ref[...] = alpha.astype(alpha_ref.dtype)

    # attention_weighted_encoding: batched (1,P) x (P,E) contraction on the MXU.
    awe = jnp.einsum("bqp,bpe->bqe",
                     alpha.reshape(TB, 1, P).astype(md),
                     enc.astype(md),
                     preferred_element_type=jnp.float32)          # (TB, 1, E)
    awe_ref[...] = awe.reshape(TB, E).astype(awe_ref.dtype)


def attention_forward(encoder_feature_out, decoder_hidden,
                      w_enc, b_enc, w_dec, b_dec, w_full, b_full,
                      *, block_b=None, matmul_dtype=jnp.float32):
    """Additive attention forward. Weights in torch layout:
    w_enc (A, E), b_enc (A,), w_dec (A, H), b_dec (A,), w_full (1, A), b_full (1,)."""
    B, P, E = encoder_feature_out.shape
    A = w_enc.shape[0]
    use_bf16 = (matmul_dtype == jnp.bfloat16)

    # Hoisted decoder projection (one batched XLA GEMM) with BOTH linear biases folded
    # in: relu(enc@W_e^T + b_e + dec@W_d^T + b_d) == relu(enc@W_e^T + att2).
    att2 = decoder_hidden @ w_dec.T + (b_dec + b_enc)             # (B, A) f32

    enc = encoder_feature_out
    w_enc_t = w_enc.T                                             # (E, A)
    w_full_row = w_full.reshape(1, A)                             # used elementwise (f32)
    b_full_s = b_full.reshape(1)                                  # scalar -> SMEM

    if use_bf16:
        # v6e/v7x fast path: bf16 matmul inputs (enc HBM traffic halved), f32 accumulate.
        enc = enc.astype(jnp.bfloat16)
        w_enc_t = w_enc_t.astype(jnp.bfloat16)

    if block_b is None:
        block_b = pl.cdiv(256, P)                   # target >= 256 rows per MXU matmul
        if B >= 2:
            block_b = min(block_b, pl.cdiv(B, 2))   # keep >= 2 grid steps (v7x: 2 TCs)
        block_b = max(1, min(block_b, B))
        if block_b >= 8:
            block_b -= block_b % 8                  # sublane-aligned batch tile
        # VMEM guard (v7x has 64 MiB physical / 32 MiB default scoped): keep the
        # double-buffered encoder block well under the limit at real shapes.
        itemsize = 2 if use_bf16 else 4
        while block_b > 8 and 2 * block_b * P * E * itemsize > (8 << 20):
            block_b -= 8

    n_blocks = pl.cdiv(B, block_b)
    Bp = n_blocks * block_b
    if Bp != B:
        enc = jnp.pad(enc, ((0, Bp - B), (0, 0), (0, 0)))
        att2 = jnp.pad(att2, ((0, Bp - B), (0, 0)))

    # Advisory hint for the XLA scheduler around the custom call.
    itemsize = 2 if use_bf16 else 4
    cost = pl.CostEstimate(
        flops=2 * Bp * P * E * A + 2 * Bp * P * A + 2 * Bp * P * E,
        transcendentals=Bp * P,
        bytes_accessed=(Bp * P * E * itemsize            # encoder features in
                        + Bp * A * 4 + E * A * itemsize  # att2 + W_enc^T
                        + Bp * E * 4 + Bp * P * 4))      # awe + alpha out

    kernel = functools.partial(attention_kernel, matmul_dtype=matmul_dtype)
    awe, alpha = pl.pallas_call(
        kernel,
        out_shape=(jax.ShapeDtypeStruct((Bp, E), jnp.float32),
                   jax.ShapeDtypeStruct((Bp, P), jnp.float32)),
        grid=(n_blocks,),
        in_specs=[
            pl.BlockSpec((block_b, P, E), lambda b: (b, 0, 0)),   # encoder features
            pl.BlockSpec((block_b, A),    lambda b: (b, 0)),      # dec proj + biases
            pl.BlockSpec((E, A),          lambda b: (0, 0)),      # encoder_att weight^T
            pl.BlockSpec((1, A),          lambda b: (0, 0)),      # full_att weight (row)
            pl.BlockSpec(memory_space=pltpu.MemorySpace.SMEM),    # full_att bias (scalar)
        ],
        out_specs=(
            pl.BlockSpec((block_b, E), lambda b: (b, 0)),         # awe   (lane-dense)
            pl.BlockSpec((block_b, P), lambda b: (b, 0)),         # alpha (lane-dense)
        ),
        compiler_params=pltpu.CompilerParams(dimension_semantics=("parallel",)),
        cost_estimate=cost,
    )(enc, att2, w_enc_t, w_full_row, b_full_s)

    return awe[:B], alpha[:B]


def _init_linear(key, in_features, out_features):
    """Deterministic init mimicking torch.nn.Linear default (U(-1/sqrt(in), 1/sqrt(in)))."""
    k = 1.0 / jnp.sqrt(jnp.float32(in_features))
    kw, kb = jax.random.split(key)
    w = jax.random.uniform(kw, (out_features, in_features), jnp.float32, -k, k)
    b = jax.random.uniform(kb, (out_features,), jnp.float32, -k, k)
    return w, b


def reference_forward(enc, dec, w_enc, b_enc, w_dec, b_dec, w_full, b_full):
    att1 = enc @ w_enc.T + b_enc                          # (B, P, A)
    att2 = dec @ w_dec.T + b_dec                          # (B, A)
    h = jax.nn.relu(att1 + att2[:, None, :])              # (B, P, A)
    att = (h @ w_full.T + b_full)[..., 0]                 # (B, P)
    alpha = jax.nn.softmax(att, axis=1)                   # (B, P)
    awe = (enc * alpha[..., None]).sum(axis=1)            # (B, E)
    return awe, alpha


if __name__ == "__main__":
    # Small shapes consistent with the module: (B, P, E) encoder features, (B, H) hidden.
    # B=32 exercises the batch-tiling (block_b=16 -> grid of 2 parallel steps,
    # 128 matmul rows per step).
    B, P = 32, 8
    encoder_size, hidden_size, attention_size = 32, 32, 16

    key = jax.random.PRNGKey(0)
    k_enc, k_dec, k_w1, k_w2, k_w3 = jax.random.split(key, 5)

    encoder_feature_out = jax.random.normal(k_enc, (B, P, encoder_size), jnp.float32)
    decoder_hidden = jax.random.normal(k_dec, (B, hidden_size), jnp.float32)

    w_enc, b_enc = _init_linear(k_w1, encoder_size, attention_size)   # (A, E), (A,)
    w_dec, b_dec = _init_linear(k_w2, hidden_size, attention_size)    # (A, H), (A,)
    w_full, b_full = _init_linear(k_w3, attention_size, 1)            # (1, A), (1,)

    awe_ref_v, alpha_ref_v = reference_forward(
        encoder_feature_out, decoder_hidden, w_enc, b_enc, w_dec, b_dec, w_full, b_full)

    # Accurate (f32) path — matches the PyTorch/JAX reference to 1e-5.
    awe, alpha = attention_forward(
        encoder_feature_out, decoder_hidden, w_enc, b_enc, w_dec, b_dec, w_full, b_full)
    awe = jax.block_until_ready(awe)
    alpha = jax.block_until_ready(alpha)
    assert jnp.allclose(awe, awe_ref_v, atol=1e-5, rtol=1e-5)
    assert jnp.allclose(alpha, alpha_ref_v, atol=1e-5, rtol=1e-5)

    # Fast bf16-MXU path (v6e/v7x): bf16 matmul inputs, f32 accumulation & softmax.
    awe_bf, alpha_bf = attention_forward(
        encoder_feature_out, decoder_hidden, w_enc, b_enc, w_dec, b_dec, w_full, b_full,
        matmul_dtype=jnp.bfloat16)
    awe_bf = jax.block_until_ready(awe_bf)
    alpha_bf = jax.block_until_ready(alpha_bf)
    assert jnp.allclose(awe_bf, awe_ref_v, atol=2e-2, rtol=2e-2)
    assert jnp.allclose(alpha_bf, alpha_ref_v, atol=2e-2, rtol=2e-2)

    print("KERNEL_OK")
</pallas_src>

<mosaic_0001>
module attributes {stable_mosaic.version = 11 : i64} {
  func.func @attention_kernel(%arg0: i32, %arg1: memref<16x8x32xf32, #tpu.memory_space<vmem>>, %arg2: memref<16x16xf32, #tpu.memory_space<vmem>>, %arg3: memref<32x16xf32, #tpu.memory_space<vmem>>, %arg4: memref<1x16xf32, #tpu.memory_space<vmem>>, %arg5: memref<1xf32, #tpu.memory_space<smem>>, %arg6: memref<16x32xf32, #tpu.memory_space<vmem>>, %arg7: memref<16x8xf32, #tpu.memory_space<vmem>>) attributes {dimension_semantics = [#tpu.dimension_semantics<parallel>], iteration_bounds = array<i64: 2>, scalar_prefetch = 0 : i64, scratch_operands = 0 : i64, tpu.core_type = #tpu.core_type<tc>, window_params = [{transform_indices = @transform_0, window_bounds = array<i64: 16, 8, 32>}, {transform_indices = @transform_1, window_bounds = array<i64: 16, 16>}, {pipeline_mode = #tpu.pipeline_mode<synchronous>, transform_indices = @transform_2, window_bounds = array<i64: 32, 16>}, {pipeline_mode = #tpu.pipeline_mode<synchronous>, transform_indices = @transform_3, window_bounds = array<i64: 1, 16>}, {transform_indices = @transform_4, window_bounds = array<i64: 1>}, {transform_indices = @transform_5, window_bounds = array<i64: 16, 32>}, {transform_indices = @transform_6, window_bounds = array<i64: 16, 8>}]} {
    %c0 = arith.constant 0 : index
    %c0_0 = arith.constant 0 : index
    %c0_1 = arith.constant 0 : index
    %0 = vector.load %arg1[%c0, %c0_0, %c0_1] : memref<16x8x32xf32, #tpu.memory_space<vmem>>, vector<16x8x32xf32>
    %1 = vector.shape_cast %0 : vector<16x8x32xf32> to vector<128x32xf32>
    %c0_2 = arith.constant 0 : index
    %c0_3 = arith.constant 0 : index
    %2 = vector.load %arg3[%c0_2, %c0_3] : memref<32x16xf32, #tpu.memory_space<vmem>>, vector<32x16xf32>
    %cst = arith.constant dense<0.000000e+00> : vector<128x16xf32>
    %3 = tpu.matmul %1, %2, %cst {dimension_numbers = #tpu.dot_dimension_numbers<[1], [0], [0], [1], [0, 0, 1, 1], [], []>} : vector<128x32xf32>, vector<32x16xf32>, vector<128x16xf32> -> vector<128x16xf32>
    %4 = vector.shape_cast %3 : vector<128x16xf32> to vector<16x8x16xf32>
    %c0_4 = arith.constant 0 : index
    %c0_5 = arith.constant 0 : index
    %5 = vector.load %arg2[%c0_4, %c0_5] : memref<16x16xf32, #tpu.memory_space<vmem>>, vector<16x16xf32>
    %6 = vector.shape_cast %5 : vector<16x16xf32> to vector<16x1x16xf32>
    %7 = vector.broadcast %6 : vector<16x1x16xf32> to vector<16x8x16xf32>
    %8 = arith.addf %4, %7 : vector<16x8x16xf32>
    %cst_6 = arith.constant 0.000000e+00 : f32
    %9 = vector.broadcast %cst_6 : f32 to vector<16x8x16xf32>
    %10 = arith.maximumf %8, %9 : vector<16x8x16xf32>
    %c0_7 = arith.constant 0 : index
    %c0_8 = arith.constant 0 : index
    %11 = vector.load %arg4[%c0_7, %c0_8] : memref<1x16xf32, #tpu.memory_space<vmem>>, vector<1x16xf32>
    %12 = vector.shape_cast %11 : vector<1x16xf32> to vector<1x1x16xf32>
    %13 = vector.broadcast %12 : vector<1x1x16xf32> to vector<16x8x16xf32>
    %14 = arith.mulf %10, %13 : vector<16x8x16xf32>
    %cst_9 = arith.constant dense<0.000000e+00> : vector<16x8xf32>
    %15 = vector.multi_reduction <add>, %14, %cst_9 [2] : vector<16x8x16xf32> to vector<16x8xf32>
    %c0_10 = arith.constant 0 : index
    %16 = memref.load %arg5[%c0_10] : memref<1xf32, #tpu.memory_space<smem>>
    %17 = vector.broadcast %16 : f32 to vector<16x8xf32>
    %18 = arith.addf %15, %17 : vector<16x8xf32>
    %cst_11 = arith.constant dense<0xFF800000> : vector<16xf32>
    %19 = vector.multi_reduction <maximumf>, %18, %cst_11 [1] : vector<16x8xf32> to vector<16xf32>
    %20 = vector.shape_cast %19 : vector<16xf32> to vector<16x1xf32>
    %21 = vector.broadcast %20 : vector<16x1xf32> to vector<16x8xf32>
    %22 = arith.subf %18, %21 : vector<16x8xf32>
    %23 = math.exp %22 : vector<16x8xf32>
    %cst_12 = arith.constant dense<0.000000e+00> : vector<16xf32>
    %24 = vector.multi_reduction <add>, %23, %cst_12 [1] : vector<16x8xf32> to vector<16xf32>
    %25 = vector.shape_cast %24 : vector<16xf32> to vector<16x1xf32>
    %26 = tpu.reciprocal %25 : vector<16x1xf32> -> vector<16x1xf32>
    %27 = vector.broadcast %26 : vector<16x1xf32> to vector<16x8xf32>
    %28 = arith.mulf %23, %27 : vector<16x8xf32>
    %c0_13 = arith.constant 0 : index
    %c0_14 = arith.constant 0 : index
    %29 = vector.load %arg7[%c0_13, %c0_14] : memref<16x8xf32, #tpu.memory_space<vmem>>, vector<16x8xf32>
    tpu.vector_store %arg7[%c0_13, %c0_14], %28 {strides = array<i32>} : memref<16x8xf32, #tpu.memory_space<vmem>>, vector<16x8xf32>,
    %30 = vector.shape_cast %28 : vector<16x8xf32> to vector<16x1x8xf32>
    "tpu.trace_start"() <{level = 10 : i32, message = "bqp,bpe->bqe"}> : () -> ()
    %cst_15 = arith.constant dense<0.000000e+00> : vector<16x1x32xf32>
    %31 = tpu.matmul %30, %0, %cst_15 {dimension_numbers = #tpu.dot_dimension_numbers<[2], [1], [1], [2], [0, 0, 0, 1, 1, 2], [0], [0]>} : vector<16x1x8xf32>, vector<16x8x32xf32>, vector<16x1x32xf32> -> vector<16x1x32xf32>
    "tpu.trace_stop"() : () -> ()
    %32 = vector.shape_cast %31 : vector<16x1x32xf32> to vector<16x32xf32>
    %c0_16 = arith.constant 0 : index
    %c0_17 = arith.constant 0 : index
    %33 = vector.load %arg6[%c0_16, %c0_17] : memref<16x32xf32, #tpu.memory_space<vmem>>, vector<16x32xf32>
    tpu.vector_store %arg6[%c0_16, %c0_17], %32 {strides = array<i32>} : memref<16x32xf32, #tpu.memory_space<vmem>>, vector<16x32xf32>,
    return
  }
  func.func @transform_0(%arg0: i32) -> (i32, i32, i32) {
    %c0_i32 = arith.constant 0 : i32
    %c0_i32_0 = arith.constant 0 : i32
    %c0_i32_1 = arith.constant 0 : i32
    return %arg0, %c0_i32, %c0_i32_0 : i32, i32, i32
  }
  func.func @transform_1(%arg0: i32) -> (i32, i32) {
    %c0_i32 = arith.constant 0 : i32
    %c0_i32_0 = arith.constant 0 : i32
    return %arg0, %c0_i32 : i32, i32
  }
  func.func @transform_2(%arg0: i32) -> (i32, i32) {
    %c0_i32 = arith.constant 0 : i32
    %c0_i32_0 = arith.constant 0 : i32
    %c0_i32_1 = arith.constant 0 : i32
    return %c0_i32, %c0_i32_0 : i32, i32
  }
  func.func @transform_3(%arg0: i32) -> (i32, i32) {
    %c0_i32 = arith.constant 0 : i32
    %c0_i32_0 = arith.constant 0 : i32
    %c0_i32_1 = arith.constant 0 : i32
    return %c0_i32, %c0_i32_0 : i32, i32
  }
  func.func @transform_4(%arg0: i32) -> i32 {
    %c0_i32 = arith.constant 0 : i32
    %c0_i32_0 = arith.constant 0 : i32
    return %c0_i32 : i32
  }
  func.func @transform_5(%arg0: i32) -> (i32, i32) {
    %c0_i32 = arith.constant 0 : i32
    %c0_i32_0 = arith.constant 0 : i32
    return %arg0, %c0_i32 : i32, i32
  }
  func.func @transform_6(%arg0: i32) -> (i32, i32) {
    %c0_i32 = arith.constant 0 : i32
    %c0_i32_0 = arith.constant 0 : i32
    return %arg0, %c0_i32 : i32, i32
  }
}

</mosaic_0001>

<bundles_post_ra>
// kernel: tpu_custom_call.1
= control target key start
LH: loop header
LB: loop body
LE: loop exit
PB: predicated region body
PF: predicated region fallthrough
CT: control target
= control target key end

     0   :  { %s3965_s0 = inlined_call_operand.hbm [shape: f32[32,8,32], index: 0, kind: input, shape index: {}]   ;;  %s3966_s1 = inlined_call_operand.vmem [shape: f32[32,16], index: 1, kind: input, shape index: {}]   ;;  %s3967_s2 = inlined_call_operand.vmem [shape: f32[32,16], index: 2, kind: input, shape index: {}]   ;;  %s3968_s3 = inlined_call_operand.vmem [shape: f32[1,16], index: 3, kind: input, shape index: {}]   ;;  %s3969_s4 = inlined_call_operand.<no memory space> [shape: f32[1], index: 4, kind: input, shape index: {}]   ;;  %s3970_s5 = inlined_call_operand.hbm [shape: f32[32,32], index: 5, kind: output, shape index: {0}]   ;;  %s3971_s6 = inlined_call_operand.vmem [shape: f32[32,8], index: 6, kind: output, shape index: {1}]  }
   0x1   :  { %12 = sst [smem:[#allocation2]] %s3969_s4 }
   0x2   :  { %13 = vsyncpa [#allocation4], 0 }
   0x3   :  { %15 = vsyncpa [#allocation4 + $0x1], 0 }
   0x4   :  { %16 = vsyncpa [#allocation5], 0 }
   0x5   :  { %18 = vsyncpa [#allocation5 + $0x1], 0  ;;  %s3262_s23 = smov 0   ;;  %s3264_s24 = smov 0  }
   0x6   :  { %s3266_s25 = smov 0   ;;  %s3268_s26 = smov 0  }
   0x7 LB: > { %s3283_s4 = sadd.s32 4294967295, %s3212_s26   ;;  %s2798_s27 = sadd.s32 4294967294, %s3212_s26   ;;  %s3212_s26 = sphi %s3268_s26, %s3986_s26   ;;  %s3208_s25 = sphi %s3266_s25, %s3985_s25   ;;  %s3204_s24 = sphi %s3264_s24, %s3984_s24   ;;  %s3200_s23 = sphi %s3262_s23, %s3983_s23  }
   0x8   : > { %s3287_s28 = sadd.s32 1, %s3212_s26   ;;  %s31_s29 = sadd.s32 1, %s3208_s25 }
   0x9   : > { %s28_s30 = ssub.s32 %s3212_s26, %s3287_s28  ;;  %p38_p0 = scmp.ne.s32.totalorder %s3208_s25, %s3204_s24 }
   0xa   : > { %p29_p1 = scmp.eq.s32.totalorder %s28_s30, 0  ;;  %p39_p2 = scmp.eq.s32.totalorder %s3212_s26, 0 }
   0xb   : > { %p44_p3 = scmp.ne.s32.totalorder %s3204_s24, %s3200_s23  ;;  %p45_p4 = scmp.eq.s32.totalorder %s3283_s4, 0 }
   0xc   : > { %s3299_s7 = scalar_select %p29_p1, %s3208_s25, %s31_s29  }
   0xd   : > { %p3301_p5 = por %p39_p2, %p38_p0  ;;  %p3305_p6 = por %p45_p4, %p44_p3 }
   0xe   : > { %p157_p7 = scmp.eq.s32.totalorder %s3283_s4, 1  ;;  %p163_p8 = scmp.eq.s32.totalorder %s2798_s27, 1 }
   0xf   : > { %s3975_s9 = scalar_select %p3305_p6, 1, 0 }
  0x10   : > { %p3027_p10 = scmp.lt.s32.totalorder %s3212_s26, 2  ;;  %p3312_p11 = por %p157_p7, %p38_p0 }
  0x11   : > { %p3316_p12 = por %p163_p8, %p44_p3  ;;  %s218_s12 = sand.u32 1, %s3208_s25  }
  0x12   : > { %s3976_s10 = scalar_select %p3312_p11, 1, 0 }
  0x13   : > { %s3977_s11 = scalar_select %p3316_p12, 1, 0 }
  0x14   : > { %s2849_s13 = sshll.u32 %s3212_s26, 11  ;;  %s2801_s14 = sshll.u32 %s218_s12, 7 }
  0x15   : > { %s3325_s17 = scalar_lea.hbm %s3965_s0, %s2849_s13  ;;  %s222_s18 = scalar_lea.vmem [#allocation3], %s2801_s14 }
  0x16   : > { %s229_s19 = sshll.u32 %s222_s18, 4  ;;  %p3329_p13 = pnand %p3027_p10, %p3301_p5  ;;  %s3333_s19 = int_to_ptr.vmem [resolvable:$true] %s229_s19 }
  0x17   : > { %s3335_s21 = scalar_lea.sflag [#allocation4], %s218_s12  ;;  %s3120_s22 = scalar_lea.hbm %s3325_s17, 2048 }
  0x18   : > { %p3121_p0 = scmp.ne.s32.totalorder %s3325_s17, %s3120_s22  ;;  %p3122_p1 = pneg %p3329_p13 }
  0x19   : > { %s3125_s30 = scalar_lea.hbm %s3965_s0, 4096  ;;  %p3126_p4 = scmp.lt.s32.totalorder %s3325_s17, %s3965_s0 }
  0x1a   : > { %p3123_p2 = pnand %p3122_p1, %p3121_p0  ;;  %p3127_p5 = scmp.lt.s32.totalorder %s3125_s30, %s3120_s22 }
  0x1c   : > { %p3124_p3 = pneg %p3123_p2  ;;  %p3128_p7 = por %p3127_p5, %p3126_p4 }
  0x1e   : > { %p3129_p8 = pnand %p3128_p7, %p3124_p3 }
  0x20   : > { %3132 = shalt.err (!%p3129_p8)
}
  0x21   : > { %s3133_s12 = scalar_lea.vmem %s3333_s19, 2048  ;;  %s3214_s14 = smov [#allocation3]  }
  0x22   : > { %p3134_p10 = scmp.ne.s32.totalorder %s3333_s19, %s3133_s12  ;;  %s3138_s15 = sshll.u32 %s3214_s14, 4  ;;  %s3139_s15 = int_to_ptr.vmem [resolvable:$false] %s3138_s15 }
  0x23   : > { %s3140_s16 = scalar_lea.vmem %s3139_s15, 4096  ;;  %p3141_p2 = scmp.lt.s32.totalorder %s3333_s19, %s3139_s15 }
  0x24   : > { %p3136_p9 = pnand %p3134_p10, %p3122_p1  ;;  %p3142_p12 = scmp.lt.s32.totalorder %s3140_s16, %s3133_s12 }
  0x26   : > { %p3137_p0 = pneg %p3136_p9  ;;  %p3143_p11 = por %p3142_p12, %p3141_p2 }
  0x28   : > { %p3144_p6 = pnand %p3143_p11, %p3137_p0 }
  0x2a   : > { %3147 = shalt.err (!%p3144_p6)
}
  0x2b   : > { %s3215_s18 = smov 128   ;;  %s3216_s22 = smov 8  }
  0x2c   : > { %3022 = dma.hbm_to_vmem [thread:$0]  (!%p3329_p13), %s3325_s17, 2048, %s3333_s19, %s3335_s21, %s3215_s18, %s3215_s18, %s3216_s22  }
  0x2d   : > { %p2804_p9 = scmp.ge.s32.totalorder %s3212_s26, 1  ;;  %p246_p1 = scmp.lt.s32.totalorder %s3212_s26, 3 }
  0x2f   : > { %p247_p3 = pnand %p2804_p9, %p246_p1 }
  0x30   : > { %s3359_s27 = sand.u32 (!%p247_p3), 1, %s3204_s24   ;;  %p3979_p6 = scmp.ne.s32.totalorder (!%p247_p3), %s3975_s9, 0 }
  0x31   : > { %250 = sbr.rel (%p247_p3) target bundleno = 1275 (0x4fb), region = 40  ;;  %s2805_s29 = sshll.u32 (!%p247_p3), %s3359_s27, 7 }
  0x32   : > { %s253_s30 = scalar_lea.sflag (!%p247_p3), [#allocation4], %s3359_s27  ;;  %s3363_s8 = scalar_lea.vmem (!%p247_p3), [#allocation3], %s2805_s29 }
  0x36   : > { %3191 = dma.done.wait (%p3979_p6), %s253_s30, 2048  }
  0x37   : > { %3193 = vsyncadd (%p3979_p6), %s253_s30, 4294965248  ;;  %vm329_vm0 = vcmask 261120   ;;  %v328_v0 = vld [vmem:[%s3967_s2 + $0x18] sm:$0xff]  ;;  %v327_v1 = vld [vmem:[%s3967_s2 + $0x10] sm:$0xff]  ;;  %s2807_s15 = sshll.u32 %s3283_s4, 1  ;;  %v531_v22 = vlaneseq  ;;  %vm760_vm1 = vcmask 130048  }
  0x38   : > { %2903 = vmatprep.subr.mxu0 %v328_v0  ;;  %v3376_v2 = vld [vmem:[%s3363_s8] sm:$0xff]  ;;  %v326_v3 = vld [vmem:[%s3967_s2 + $0x8] sm:$0xff]  ;;  %v3390_v6 = vld [vmem:[%s3363_s8 + $0x10] sm:$0xff]  ;;  %p297_p11 = scmp.lt.s32.totalorder %s2807_s15, 3  ;;  %v3217_v20 = vmov 1966171168  }
  0x39   : > { %2904 = vmatpush3.msra.mxu0 %v328_v0  ;;  %2911 = vmatprep.mubr.msk.f32.mxu0 %vm329_vm0, %v3376_v2  ;;  %v325_v4 = vld [vmem:[%s3967_s2] sm:$0xff]  ;;  %v3387_v5 = vld [vmem:[%s3363_s8 + $0x8] sm:$0xff]  ;;  %v3397_v7 = vld [vmem:[%s3363_s8 + $0x18] sm:$0xff]  ;;  %v529_v21 = vunpack.c.l.s4 %v3217_v20  ;;  %v3433_v24 = vshrl.u32 %v531_v22, 7  ;;  %s809_s19 = sld [smem:[#allocation2]]  ;;  %vm909_vm2 = vcmask 1041409  }
  0x3a   : > { %2905 = vmatprep.subr.mxu0 %v327_v1  ;;  %v313_v8 = vld [vmem:[%s3363_s8 + $0x20] sm:$0xff]  ;;  %v314_v9 = vld [vmem:[%s3363_s8 + $0x28] sm:$0xff]  ;;  %v315_v10 = vld [vmem:[%s3363_s8 + $0x30] sm:$0xff]  ;;  %s3988_s15 = smov (!%p297_p11, %s2807_s15), 3  ;;  %vm911_vm3 = vcmask 1042434   ;;  %vm913_vm4 = vcmask 1043459  }
  0x3b   : > { %2906 = vmatpush3.msra.mxu0 %v327_v1  ;;  %v316_v11 = vld [vmem:[%s3363_s8 + $0x38] sm:$0xff]  ;;  %v317_v12 = vld [vmem:[%s3363_s8 + $0x40] sm:$0xff]  ;;  %v318_v13 = vld [vmem:[%s3363_s8 + $0x48] sm:$0xff]  ;;  %s2808_s16 = sshll.u32 %s3988_s15, 3  ;;  %v530_v23 = vunpack.c.0.s8 %v529_v21  ;;  %v3447_v32 = vsub.s32 0, %v3433_v24  ;;  %vm915_vm5 = vcmask 1044484  }
  0x3c   : > { %2907 = vmatprep.subr.mxu0 %v326_v3  ;;  %v3413_v14 = vld [vmem:[%s3363_s8 + $0x50] sm:$0xff]  ;;  %v320_v15 = vld [vmem:[%s3363_s8 + $0x58] sm:$0xff]  ;;  %v321_v16 = vld [vmem:[%s3363_s8 + $0x60] sm:$0xff]  ;;  %s300_s29 = scalar_lea.vmem %s3966_s1, %s2808_s16  ;;  %vm917_vm6 = vcmask 1045509   ;;  %vm919_vm7 = vcmask 1046534   ;;  %vm921_vm8 = vcmask 1047559   ;;  %s3820_s9 = scalar_lea.vmem %s3971_s6, %s2808_s16 }
  0x3d   : > { %2908 = vmatpush3.msra.mxu0 %v326_v3  ;;  %v322_v17 = vld [vmem:[%s3363_s8 + $0x68] sm:$0xff]  ;;  %v323_v18 = vld [vmem:[%s3363_s8 + $0x70] sm:$0xff]  ;;  %v324_v19 = vld [vmem:[%s3363_s8 + $0x78] sm:$0xff]  ;;  %v3441_v25 = vsub.s32 %v530_v23, %v3433_v24  ;;  %vm932_vm9 = vcmask 64512   ;;  %vm3220_vm10 = vmmov 0   ;;  %s2850_s14 = sshll.u32 %s3283_s4, 8 }
  0x3e   : > { %2909 = vmatprep.subr.mxu0 %v325_v4  ;;  %v523_v26 = vld [vmem:[%s300_s29] sm:$0xff]  ;;  %v524_v37 = vld [vmem:[%s300_s29 + $0x8] sm:$0xff]  ;;  %s3917_s18 = scalar_lea.hbm %s3970_s5, %s2850_s14  ;;  %s2666_s4 = scalar_lea.sflag [#allocation5], %s3359_s27 }
  0x3f   : > { %2910 = vmatpush3.msra.mxu0 %v325_v4  ;;  %v534_v27 = vrot.slane %v523_v26, %v3441_v25  ;;  %v527_v28 = vcombine.high %v523_v26, %v523_v26  ;;  %v583_v44 = vrot.slane %v524_v37, %v3441_v25  ;;  %v3458_v46 = vld [vmem:[%s3968_s3] ss:$0 sm:$0xff]  ;;  %v576_v54 = vcombine.high %v524_v37, %v524_v37  ;;  %p3980_p13 = scmp.ne.s32.totalorder %s3976_s10, 0  ;;  %s3221_s29 = smov [#allocation6]  }
  0x40   : > { %2912 = vmatmul.mubr.msk.f32.vlgmr.msra.gmra.mxu0 %vm329_vm0, %v3387_v5  ;;  %s3152_s30 = sshll.u32 %s3221_s29, 4  ;;  %s3153_s30 = int_to_ptr.vmem [resolvable:$false] %s3152_s30 }
  0x41   : > { %2914 = vmatprep.mubr.msk.f32.mxu0 %vm329_vm0, %v3390_v6  ;;  %v542_v29 = vcombine.high %v534_v27, %v534_v27  ;;  %v541_v30 = vrot.slane %v527_v28, %v3441_v25  ;;  %v550_v33 = vrot.slane %v534_v27, %v3441_v25  ;;  %v591_v58 = vcombine.high %v583_v44, %v583_v44  ;;  %s3154_s17 = scalar_lea.vmem %s3153_s30, 512 }
  0x43   : > { %v564_v31 = vrot.slane %v542_v29, %v3441_v25  ;;  %v543_v34 = vcombine.high %v541_v30, %v541_v30  ;;  %v628_v38 = vrot.slane %v550_v33, %v3447_v32  ;;  %v572_v39 = vcombine.high %v550_v33, %v550_v33 }
  0x44   : > { %2915 = vmatmul.mubr.msk.f32.gmra.mxu0 %vm329_vm0, %v3397_v7  ;;  %v557_v47 = vrot.slane %v541_v30, %v3441_v25 }
  0x45   : > { %2917 = vmatprep.mubr.msk.f32.mxu0 %vm329_vm0, %v313_v8  ;;  %v632_v35 = vrot.slane %v564_v31, %v3447_v32  ;;  %v574_v36 = vcombine.high %v564_v31, %v564_v31  ;;  %v571_v41 = vrot.slane %v543_v34, %v3441_v25  ;;  %v636_v50 = vrot.slane %v572_v39, %v3447_v32 }
  0x46   : > { %v644_v60 = vrot.slane %v557_v47, %v3447_v32  ;;  %v573_v61 = vcombine.high %v557_v47, %v557_v47  ;;  %v590_v8 = vrot.slane %v576_v54, %v3441_v25 }
  0x47   : > { %v640_v43 = vrot.slane %v574_v36, %v3447_v32  ;;  %v648_v52 = vrot.slane %v571_v41, %v3447_v32  ;;  %v575_v53 = vcombine.high %v571_v41, %v571_v41 }
  0x48   : > { %2918 = vmatmul.mubr.msk.f32.gmra.mxu0 %vm329_vm0, %v314_v9  ;;  %v592_v26 = vcombine.high %v590_v8, %v590_v8 }
  0x49   : > { %2920 = vmatprep.mubr.msk.f32.mxu0 %vm329_vm0, %v315_v10  ;;  %v656_v4 = vrot.slane %v575_v53, %v3447_v32 }
  0x4a   : > { %v620_v41 = vrot.slane %v592_v26, %v3441_v25 }
  0x4c   : > { %2921 = vmatmul.mubr.msk.f32.gmra.mxu0 %vm329_vm0, %v316_v11 }
  0x4d   : > { %2923 = vmatprep.mubr.msk.f32.mxu0 %vm329_vm0, %v317_v12  ;;  %v613_v12 = vrot.slane %v591_v58, %v3441_v25 }
  0x4f   : > { %v664_v29 = vrot.slane %v613_v12, %v3447_v32  ;;  %v623_v30 = vcombine.high %v613_v12, %v613_v12 }
  0x50   : > { %2924 = vmatmul.mubr.msk.f32.gmra.mxu0 %vm329_vm0, %v318_v13 }
  0x51   : > { %2926 = vmatprep.mubr.msk.f32.mxu0 %vm329_vm0, %v3413_v14 }
  0x54   : > { %2927 = vmatmul.mubr.msk.f32.gmra.mxu0 %vm329_vm0, %v320_v15 }
  0x55   : > { %2929 = vmatprep.mubr.msk.f32.mxu0 %vm329_vm0, %v321_v16  ;;  %v652_v16 = vrot.slane %v573_v61, %v3447_v32 }
  0x58   : > { %2930 = vmatmul.mubr.msk.f32.gmra.mxu0 %vm329_vm0, %v322_v17  ;;  %v599_v17 = vrot.slane %v583_v44, %v3441_v25 }
  0x59   : > { %2932 = vmatprep.mubr.msk.f32.mxu0 %vm329_vm0, %v323_v18 }
  0x5a   : > { %v660_v33 = vrot.slane %v599_v17, %v3447_v32 }
  0x5c   : > { %2933 = vmatmul.mubr.msk.f32.gmra.mxu0 %vm329_vm0, %v324_v19 }
 0x100   : > { %v2913_v40 = vpop.f32.mrf.mxu0 }
 0x101   : > { %v706_v42 = vadd.f32 %v2913_v40, %v632_v35  ;;  %v621_v35 = vcombine.high %v599_v17, %v599_v17 }
 0x102   : > { %v444_v45 = vpop.f32.mrf.mxu0 }
 0x103   : > { %v722_v48 = vmax.f32 %v706_v42, 0.0  ;;  %v705_v49 = vadd.f32 %v628_v38, %v444_v45  ;;  %v672_v45 = vrot.slane %v623_v30, %v3447_v32 }
 0x104   : > { %v2916_v51 = vpop.f32.mrf.mxu0 }
 0x105   : > { %v721_v55 = vmax.f32 %v705_v49, 0.0  ;;  %v708_v56 = vadd.f32 %v2916_v51, %v640_v43  ;;  %v745_v57 = vmul.f32 %v3458_v46, %v722_v48  ;;  %v668_v49 = vrot.slane %v621_v35, %v3447_v32 }
 0x106   : > { %v454_v59 = vpop.f32.mrf.mxu0 }
 0x107   : > { %v724_v62 = vmax.f32 %v708_v56, 0.0  ;;  %v707_v63 = vadd.f32 %v636_v50, %v454_v59  ;;  %v764_v0 = vsel %vm760_vm1, %v745_v57, 0.0  ;;  %v744_v1 = vmul.f32 %v3458_v46, %v721_v55 }
 0x108   : > { %765 = vadd.xlane.f32.xlu0 %v764_v0  ;;  %v2919_v3 = vpop.f32.mrf.mxu0  ;;  %v606_v50 = vrot.slane %v590_v8, %v3441_v25  ;;  %v680_v56 = vrot.slane %v620_v41, %v3447_v32  ;;  %v624_v57 = vcombine.high %v620_v41, %v620_v41 }
 0x109   : > { %v723_v9 = vmax.f32 %v707_v63, 0.0  ;;  %v710_v10 = vadd.f32 %v2919_v3, %v648_v52  ;;  %v747_v11 = vmul.f32 %v3458_v46, %v724_v62  ;;  %v761_v15 = vsel %vm760_vm1, %v744_v1, 0.0 }
 0x10a   : > { %v464_v13 = vpop.f32.mrf.mxu0  ;;  %v676_v25 = vrot.slane %v606_v50, %v3447_v32  ;;  %v622_v63 = vcombine.high %v606_v50, %v606_v50 }
 0x10b   : > { %v726_v18 = vmax.f32 %v710_v10, 0.0  ;;  %v709_v19 = vadd.f32 %v644_v60, %v464_v13  ;;  %v770_v20 = vsel %vm760_vm1, %v747_v11, 0.0  ;;  %v746_v21 = vmul.f32 %v3458_v46, %v723_v9 }
 0x10c   : > { %762 = vadd.xlane.f32.xlu0 %v761_v15  ;;  %771 = vadd.xlane.f32.xlu1 %v770_v20  ;;  %v2922_v23 = vpop.f32.mrf.mxu0  ;;  %v688_v10 = vrot.slane %v624_v57, %v3447_v32  ;;  %v684_v20 = vrot.slane %v622_v63, %v3447_v32 }
 0x10d   : > { %v725_v27 = vmax.f32 %v709_v19, 0.0  ;;  %v712_v28 = vadd.f32 %v2922_v23, %v656_v4  ;;  %v749_v34 = vmul.f32 %v3458_v46, %v726_v18  ;;  %v767_v38 = vsel %vm760_vm1, %v746_v21, 0.0 }
 0x10e   : > { %v474_v31 = vpop.f32.mrf.mxu0 }
 0x10f   : > { %v728_v36 = vmax.f32 %v712_v28, 0.0  ;;  %v711_v37 = vadd.f32 %v652_v16, %v474_v31  ;;  %v748_v39 = vmul.f32 %v3458_v46, %v725_v27  ;;  %v776_v48 = vsel %vm760_vm1, %v749_v34, 0.0 }
 0x110   : > { %768 = vadd.xlane.f32.xlu1 %v767_v38  ;;  %v2925_v40 = vpop.f32.mrf.mxu0 }
 0x111   : > { %v727_v42 = vmax.f32 %v711_v37, 0.0  ;;  %v714_v43 = vadd.f32 %v2925_v40, %v664_v29  ;;  %v773_v44 = vsel %vm760_vm1, %v748_v39, 0.0  ;;  %v751_v54 = vmul.f32 %v3458_v46, %v728_v36 }
 0x112   : > { %774 = vadd.xlane.f32.xlu0 %v773_v44  ;;  %v484_v47 = vpop.f32.mrf.mxu0  ;;  %v3512_v44 = vstv %s809_s19 }
 0x113   : > { %v730_v51 = vmax.f32 %v714_v43, 0.0  ;;  %v713_v52 = vadd.f32 %v660_v33, %v484_v47  ;;  %v750_v53 = vmul.f32 %v3458_v46, %v727_v42  ;;  %v782_v3 = vsel %vm760_vm1, %v751_v54, 0.0 }
 0x114   : > { %777 = vadd.xlane.f32.xlu1 %v776_v48  ;;  %v2928_v55 = vpop.f32.mrf.mxu0  ;;  %v844_v43 = vand.u32 127, %v531_v22 }
 0x115   : > { %v729_v58 = vmax.f32 %v713_v52, 0.0  ;;  %v716_v59 = vadd.f32 %v2928_v55, %v672_v45  ;;  %v779_v60 = vsel %vm760_vm1, %v750_v53, 0.0  ;;  %v753_v61 = vmul.f32 %v3458_v46, %v730_v51 }
 0x116   : > { %780 = vadd.xlane.f32.xlu0 %v779_v60  ;;  %v494_v62 = vpop.f32.mrf.mxu0 }
 0x117   : > { %v732_v0 = vmax.f32 %v716_v59, 0.0  ;;  %v715_v1 = vadd.f32 %v668_v49, %v494_v62  ;;  %v752_v4 = vmul.f32 %v3458_v46, %v729_v58  ;;  %v788_v9 = vsel %vm760_vm1, %v753_v61, 0.0 }
 0x118   : > { %783 = vadd.xlane.f32.xlu1 %v782_v3  ;;  %v2931_v8 = vpop.f32.mrf.mxu0 }
 0x119   : > { %v731_v11 = vmax.f32 %v715_v1, 0.0  ;;  %v718_v12 = vadd.f32 %v2931_v8, %v680_v56  ;;  %v785_v13 = vsel %vm760_vm1, %v752_v4, 0.0  ;;  %v755_v15 = vmul.f32 %v3458_v46, %v732_v0 }
 0x11a   : > { %786 = vadd.xlane.f32.xlu0 %v785_v13  ;;  %v504_v16 = vpop.f32.mrf.mxu0 }
 0x11b   : > { %v734_v17 = vmax.f32 %v718_v12, 0.0  ;;  %v717_v18 = vadd.f32 %v676_v25, %v504_v16  ;;  %v754_v19 = vmul.f32 %v3458_v46, %v731_v11  ;;  %v794_v23 = vsel %vm760_vm1, %v755_v15, 0.0 }
 0x11c   : > { %789 = vadd.xlane.f32.xlu1 %v788_v9  ;;  %v2934_v21 = vpop.f32.mrf.mxu0 }
 0x11d   : > { %v733_v26 = vmax.f32 %v717_v18, 0.0  ;;  %v720_v27 = vadd.f32 %v2934_v21, %v688_v10  ;;  %v791_v28 = vsel %vm760_vm1, %v754_v19, 0.0  ;;  %v757_v29 = vmul.f32 %v3458_v46, %v734_v17 }
 0x11e   : > { %792 = vadd.xlane.f32.xlu0 %v791_v28  ;;  %v514_v30 = vpop.f32.mrf.mxu0 }
 0x11f   : > { %v736_v31 = vmax.f32 %v720_v27, 0.0  ;;  %v719_v33 = vadd.f32 %v684_v20, %v514_v30  ;;  %v756_v34 = vmul.f32 %v3458_v46, %v733_v26  ;;  %v800_v37 = vsel %vm760_vm1, %v757_v29, 0.0 }
 0x120   : > { %795 = vadd.xlane.f32.xlu1 %v794_v23 }
 0x121   : > { %v735_v35 = vmax.f32 %v719_v33, 0.0  ;;  %v797_v36 = vsel %vm760_vm1, %v756_v34, 0.0  ;;  %v759_v38 = vmul.f32 %v3458_v46, %v736_v31 }
 0x122   : > { %798 = vadd.xlane.f32.xlu0 %v797_v36 }
 0x123   : > { %v758_v39 = vmul.f32 %v3458_v46, %v735_v35  ;;  %v806_v41 = vsel %vm760_vm1, %v759_v38, 0.0  ;;  %v3518_v46 = vsub.s32 %v844_v43, %v3433_v24 }
 0x124   : > { %801 = vadd.xlane.f32.xlu1 %v800_v37 }
 0x125   : > { %v803_v40 = vsel %vm760_vm1, %v758_v39, 0.0 }
 0x126   : > { %804 = vadd.xlane.f32.xlu0 %v803_v40 }
 0x128   : > { %807 = vadd.xlane.f32.xlu1 %v806_v41 }
 0x191   : > { %v766_v42 = vpop.xlane.xlu0 %765 }
 0x192   : > { %v3521_v49 = vadd.f32 %v3512_v44, %v766_v42 }
 0x194   : > { %v852_v53 = vrot.slane %v3521_v49, %v3518_v46 }
 0x195   : > { %v763_v45 = vpop.xlane.xlu0 %762  ;;  %v772_v47 = vpop.xlane.xlu1 %771 }
 0x196   : > { %v3515_v48 = vadd.f32 %v3512_v44, %v763_v45  ;;  %v3526_v51 = vadd.f32 %v3512_v44, %v772_v47 }
 0x198   : > { %v848_v50 = vrot.slane %v3515_v48, %v3518_v46  ;;  %v860_v58 = vrot.slane %v3526_v51, %v3518_v46 }
 0x199   : > { %v769_v22 = vpop.xlane.xlu1 %768 }
 0x19a   : > { %v3529_v52 = vadd.f32 %v3512_v44, %v769_v22  ;;  %v910_v57 = vsel %vm909_vm2, %v852_v53, %v848_v50 }
 0x19b   : > { %v775_v54 = vpop.xlane.xlu0 %774 }
 0x19c   : > { %v856_v55 = vrot.slane %v3529_v52, %v3518_v46  ;;  %v3536_v56 = vadd.f32 %v3512_v44, %v775_v54 }
 0x19d   : > { %v778_v59 = vpop.xlane.xlu1 %777 }
 0x19e   : > { %v912_v60 = vsel %vm911_vm3, %v856_v55, %v910_v57  ;;  %v864_v61 = vrot.slane %v3536_v56, %v3518_v46  ;;  %v3545_v62 = vadd.f32 %v3512_v44, %v778_v59  ;;  %v3614_v59 = vsub.s32 1, %v3433_v24 }
 0x19f   : > { %v914_v25 = vsel %vm913_vm4, %v860_v58, %v912_v60  ;;  %v781_v63 = vpop.xlane.xlu0 %780  ;;  %v3218_v58 = vmov 0   ;;  %v3620_v60 = vsub.s32 3, %v3433_v24 }
 0x1a0   : > { %v916_v0 = vsel %vm915_vm5, %v864_v61, %v914_v25  ;;  %v868_v1 = vrot.slane %v3545_v62, %v3518_v46  ;;  %v3552_v3 = vadd.f32 %v3512_v44, %v781_v63  ;;  %3070 = vset.pattern.permute.xlu1 %v3218_v58  ;;  %3069 = vset.pattern.permute.xlu0 %v3218_v58 }
 0x1a1   : > { %v784_v4 = vpop.xlane.xlu1 %783 }
 0x1a2   : > { %v872_v8 = vrot.slane %v3552_v3, %v3518_v46  ;;  %v3557_v9 = vadd.f32 %v3512_v44, %v784_v4  ;;  %v918_v10 = vsel %vm917_vm6, %v868_v1, %v916_v0 }
 0x1a3   : > { %v787_v11 = vpop.xlane.xlu0 %786 }
 0x1a4   : > { %v876_v12 = vrot.slane %v3557_v9, %v3518_v46  ;;  %v3563_v13 = vadd.f32 %v3512_v44, %v787_v11  ;;  %v920_v15 = vsel %vm919_vm7, %v872_v8, %v918_v10  ;;  %v3628_v8 = vsub.s32 4, %v3433_v24 }
 0x1a5   : > { %v790_v16 = vpop.xlane.xlu1 %789 }
 0x1a6   : > { %v880_v17 = vrot.slane %v3563_v13, %v3518_v46  ;;  %v3569_v18 = vadd.f32 %v3512_v44, %v790_v16  ;;  %v922_v19 = vsel %vm921_vm8, %v876_v12, %v920_v15  ;;  %v3633_v16 = vsub.s32 5, %v3433_v24 }
 0x1a7   : > { %v793_v20 = vpop.xlane.xlu0 %792  ;;  %v933_v21 = vsel %vm932_vm9, %v922_v19, -inf }
 0x1a8   : > { %v884_v23 = vrot.slane %v3569_v18, %v3518_v46  ;;  %v3576_v26 = vadd.f32 %v3512_v44, %v793_v20  ;;  %934 = vmax.xlane.f32.xlu0 %v933_v21 }
 0x1a9   : > { %v796_v27 = vpop.xlane.xlu1 %795 }
 0x1aa   : > { %v923_v28 = vsel %vm909_vm2, %v884_v23, %v880_v17  ;;  %v888_v29 = vrot.slane %v3576_v26, %v3518_v46  ;;  %v3582_v30 = vadd.f32 %v3512_v44, %v796_v27  ;;  %v3643_v23 = vsub.s32 7, %v3433_v24 }
 0x1ab   : > { %v799_v31 = vpop.xlane.xlu0 %798 }
 0x1ac   : > { %v924_v33 = vsel %vm911_vm3, %v888_v29, %v923_v28  ;;  %v892_v34 = vrot.slane %v3582_v30, %v3518_v46  ;;  %v3588_v35 = vadd.f32 %v3512_v44, %v799_v31 }
 0x1ad   : > { %v802_v36 = vpop.xlane.xlu1 %801 }
 0x1ae   : > { %v925_v37 = vsel %vm913_vm4, %v892_v34, %v924_v33  ;;  %v896_v38 = vrot.slane %v3588_v35, %v3518_v46  ;;  %v3594_v39 = vadd.f32 %v3512_v44, %v802_v36 }
 0x1af   : > { %v805_v40 = vpop.xlane.xlu0 %804 }
 0x1b0   : > { %v926_v41 = vsel %vm915_vm5, %v896_v38, %v925_v37  ;;  %v900_v42 = vrot.slane %v3594_v39, %v3518_v46  ;;  %v3600_v43 = vadd.f32 %v3512_v44, %v805_v40 }
 0x1b1   : > { %v808_v45 = vpop.xlane.xlu1 %807 }
 0x1b2   : > { %v904_v47 = vrot.slane %v3600_v43, %v3518_v46  ;;  %v3605_v50 = vadd.f32 %v3512_v44, %v808_v45  ;;  %v927_v22 = vsel %vm917_vm6, %v900_v42, %v926_v41  ;;  %v3617_v44 = vsub.s32 2, %v3433_v24 }
 0x1b4   : > { %v908_v53 = vrot.slane %v3605_v50, %v3518_v46  ;;  %v928_v54 = vsel %vm919_vm7, %v904_v47, %v927_v22 }
 0x1b6   : > { %v929_v55 = vsel %vm921_vm8, %v908_v53, %v928_v54 }
 0x1b7   : > { %v936_v57 = vsel %vm932_vm9, %v929_v55, -inf }
 0x1b8   : > { %937 = vmax.xlane.f32.xlu1 %v936_v57 }
 0x231   : > { %v935_v61 = vpop.xlane.xlu0 %934 }
 0x232   : > { %v944_v25 = vrot.slane %v935_v61, %v3447_v32  ;;  %v948_v63 = vrot.slane %v935_v61, %v3614_v59  ;;  %v952_v0 = vrot.slane %v935_v61, %v3617_v44  ;;  %v956_v10 = vrot.slane %v935_v61, %v3620_v60 }
 0x233   : > { %v960_v17 = vrot.slane %v935_v61, %v3628_v8  ;;  %v964_v20 = vrot.slane %v935_v61, %v3633_v16  ;;  %v972_v34 = vrot.slane %v935_v61, %v3643_v23 }
 0x234   : > { %v1021_v1 = vsub.f32 %v3515_v48, %v944_v25  ;;  %v1022_v4 = vsub.f32 %v3521_v49, %v948_v63  ;;  %v1023_v11 = vsub.f32 %v3529_v52, %v952_v0  ;;  %v1024_v19 = vsub.f32 %v3526_v51, %v956_v10 }
 0x235   : > { %v3638_v49 = vsub.s32 6, %v3433_v24  ;;  %v1025_v21 = vsub.f32 %v3536_v56, %v960_v17  ;;  %v1026_v28 = vsub.f32 %v3545_v62, %v964_v20  ;;  %v1028_v42 = vsub.f32 %v3557_v9, %v972_v34 }
 0x236   : > { %v1037_v12 = vmul.f32 1.442695, %v1021_v1  ;;  %v1039_v15 = vmul.f32 1.442695, %v1022_v4  ;;  %v1041_v48 = vmul.f32 1.442695, %v1023_v11 }
 0x237   : > { %v1043_v52 = vmul.f32 1.442695, %v1024_v19  ;;  %v968_v27 = vrot.slane %v935_v61, %v3638_v49  ;;  %v1045_v51 = vmul.f32 1.442695, %v1025_v21  ;;  %v1047_v36 = vmul.f32 1.442695, %v1026_v28 }
 0x238   : > { %3073 = vpow2.f32 %v1037_v12  ;;  %v1051_v53 = vmul.f32 1.442695, %v1028_v42 }
 0x239   : > { %3075 = vpow2.f32 %v1039_v15  ;;  %v1027_v56 = vsub.f32 %v3552_v3, %v968_v27 }
 0x23a   : > { %3077 = vpow2.f32 %v1041_v48 }
 0x23b   : > { %3079 = vpow2.f32 %v1043_v52  ;;  %v1049_v3 = vmul.f32 1.442695, %v1027_v56 }
 0x23c   : > { %3081 = vpow2.f32 %v1045_v51 }
 0x23d   : > { %3083 = vpow2.f32 %v1047_v36 }
 0x241   : > { %v938_v29 = vpop.xlane.xlu1 %937 }
 0x242   : > { %v980_v31 = vrot.slane %v938_v29, %v3614_v59  ;;  %v988_v33 = vrot.slane %v938_v29, %v3620_v60  ;;  %v996_v38 = vrot.slane %v938_v29, %v3633_v16  ;;  %v1004_v45 = vrot.slane %v938_v29, %v3643_v23 }
 0x243   : > { %v984_v9 = vrot.slane %v938_v29, %v3617_v44  ;;  %v992_v61 = vrot.slane %v938_v29, %v3628_v8 }
 0x244   : > { %v1030_v37 = vsub.f32 %v3569_v18, %v980_v31  ;;  %v1032_v62 = vsub.f32 %v3582_v30, %v988_v33  ;;  %v976_v18 = vrot.slane %v938_v29, %v3447_v32  ;;  %v1034_v47 = vsub.f32 %v3594_v39, %v996_v38 }
 0x245   : > { %v3652_v24 = vpop.eup %3073  ;;  %v1036_v55 = vsub.f32 %v3605_v50, %v1004_v45  ;;  %v1031_v25 = vsub.f32 %v3576_v26, %v984_v9  ;;  %v1000_v50 = vrot.slane %v938_v29, %v3638_v49  ;;  %v1033_v1 = vsub.f32 %v3588_v35, %v992_v61 }
 0x246   : > { %v3656_v40 = vpop.eup %3075  ;;  %v1055_v41 = vmul.f32 1.442695, %v1030_v37  ;;  %1086 = vperm.xlu0 %3069, %v3652_v24   ;;  %v1059_v22 = vmul.f32 1.442695, %v1032_v62  ;;  %v1029_v54 = vsub.f32 %v3563_v13, %v976_v18  ;;  %v1063_v57 = vmul.f32 1.442695, %v1034_v47 }
 0x247   : > { %1089 = vperm.xlu1 %3070, %v3656_v40   ;;  %v3664_v30 = vpop.eup %3077  ;;  %v1067_v63 = vmul.f32 1.442695, %v1036_v55  ;;  %v1057_v4 = vmul.f32 1.442695, %v1031_v25  ;;  %v1035_v11 = vsub.f32 %v3600_v43, %v1000_v50  ;;  %v1061_v12 = vmul.f32 1.442695, %v1033_v1 }
 0x248   : > { %3085 = vpow2.f32 %v1055_v41  ;;  %v3670_v58 = vpop.eup %3079  ;;  %v1053_v39 = vmul.f32 1.442695, %v1029_v54 }
 0x249   : > { %3087 = vpow2.f32 %v1049_v3  ;;  %v3675_v0 = vpop.eup %3081  ;;  %v1065_v17 = vmul.f32 1.442695, %v1035_v11 }
 0x24a   : > { %3089 = vpow2.f32 %v1059_v22  ;;  %v3678_v13 = vpop.eup %3083 }
 0x24b   : > { %1092 = vperm.xlu1 %3070, %v3664_v30   ;;  %3091 = vpow2.f32 %v1051_v53 }
 0x24c   : > { %3093 = vpow2.f32 %v1063_v57 }
 0x24d   : > { %3095 = vpow2.f32 %v1053_v39 }
 0x24e   : > { %3097 = vpow2.f32 %v1067_v63 }
 0x24f   : > { %1095 = vperm.xlu1 %3070, %v3670_v58   ;;  %3099 = vpow2.f32 %v1057_v4 }
 0x250   : > { %3101 = vpow2.f32 %v1061_v12 }
 0x251   : > { %3103 = vpow2.f32 %v1065_v17 }
 0x253   : > { %1098 = vperm.xlu1 %3070, %v3675_v0  }
 0x255   : > { %v3682_v10 = vpop.eup %3085 }
 0x256   : > { %1113 = vperm.xlu0 %3069, %v3682_v10   ;;  %v3686_v26 = vpop.eup %3087 }
 0x257   : > { %1101 = vperm.xlu1 %3070, %v3678_v13   ;;  %v3689_v15 = vpop.eup %3089 }
 0x258   : > { %v3693_v35 = vpop.eup %3091 }
 0x259   : > { %v3695_v19 = vpop.eup %3093 }
 0x25a   : > { %1119 = vperm.xlu0 %3069, %v3689_v15   ;;  %v3699_v48 = vpop.eup %3095 }
 0x25b   : > { %1104 = vperm.xlu1 %3070, %v3686_v26   ;;  %v3701_v43 = vpop.eup %3097 }
 0x25c   : > { %v3705_v20 = vpop.eup %3099 }
 0x25d   : > { %v3708_v21 = vpop.eup %3101 }
 0x25e   : > { %1125 = vperm.xlu0 %3069, %v3695_v19   ;;  %v3711_v52 = vpop.eup %3103 }
 0x25f   : > { %1107 = vperm.xlu1 %3070, %v3693_v35  }
 0x262   : > { %1131 = vperm.xlu0 %3069, %v3701_v43  }
 0x263   : > { %1110 = vperm.xlu1 %3070, %v3699_v48  }
 0x267   : > { %1116 = vperm.xlu1 %3070, %v3705_v20  }
 0x26b   : > { %1122 = vperm.xlu1 %3070, %v3708_v21  }
 0x26f   : > { %1128 = vperm.xlu1 %3070, %v3711_v52  }
 0x2c1   : > { %v1087_v31 = vpop.permute.xlu0 %1086 }
 0x2c2   : > { %v1090_v27 = vpop.permute.xlu1 %1089  ;;  %v1136_v56 = vrot.slane %v1087_v31, %v3518_v46 }
 0x2c3   : > { %v1140_v34 = vrot.slane %v1090_v27, %v3518_v46 }
 0x2c5   : > { %v1197_v41 = vsel %vm909_vm2, %v1140_v34, %v1136_v56 }
 0x2c6   : > { %v1093_v28 = vpop.permute.xlu1 %1092 }
 0x2c7   : > { %v1144_v36 = vrot.slane %v1093_v28, %v3518_v46 }
 0x2c9   : > { %v1198_v18 = vsel %vm911_vm3, %v1144_v36, %v1197_v41 }
 0x2ca   : > { %v1096_v51 = vpop.permute.xlu1 %1095 }
 0x2cb   : > { %v1148_v37 = vrot.slane %v1096_v51, %v3518_v46 }
 0x2cd   : > { %v1199_v47 = vsel %vm913_vm4, %v1148_v37, %v1198_v18 }
 0x2ce   : > { %v1099_v29 = vpop.permute.xlu1 %1098 }
 0x2cf   : > { %v1152_v38 = vrot.slane %v1099_v29, %v3518_v46 }
 0x2d1   : > { %v1114_v3 = vpop.permute.xlu0 %1113  ;;  %v1200_v22 = vsel %vm915_vm5, %v1152_v38, %v1199_v47 }
 0x2d2   : > { %v1102_v33 = vpop.permute.xlu1 %1101  ;;  %v1172_v50 = vrot.slane %v1114_v3, %v3518_v46  ;;  %v3219_v3 = vmov 0.0  }
 0x2d3   : > { %v1156_v42 = vrot.slane %v1102_v33, %v3518_v46  ;;  %2935 = vmatprep.subr.mxu1 %v3219_v3  ;;  %2985 = vmatprep.subr.mxu0 %v3219_v3 }
 0x2d4   : > { %2936 = vmatpush3.msra.mxu1 %v3376_v2  ;;  %2986 = vmatpush3.msra.mxu0 %v3413_v14 }
 0x2d5   : > { %v1201_v54 = vsel %vm917_vm6, %v1156_v42, %v1200_v22  ;;  %v1120_v57 = vpop.permute.xlu0 %1119  ;;  %2940 = vmatprep.subr.mxu1 %v3219_v3  ;;  %2995 = vmatprep.subr.mxu0 %v3219_v3 }
 0x2d6   : > { %v1105_v62 = vpop.permute.xlu1 %1104  ;;  %v1180_v27 = vrot.slane %v1120_v57, %v3518_v46  ;;  %2937 = vmatprep.mubr.msk.f32.mxu1 %vm3220_vm10, %v3219_v3  ;;  %2987 = vmatprep.mubr.msk.f32.mxu0 %vm3220_vm10, %v3219_v3 }
 0x2d7   : > { %v1160_v45 = vrot.slane %v1105_v62, %v3518_v46 }
 0x2d9   : > { %v1202_v55 = vsel %vm919_vm7, %v1160_v45, %v1201_v54  ;;  %v1126_v4 = vpop.permute.xlu0 %1125 }
 0x2da   : > { %v1108_v53 = vpop.permute.xlu1 %1107  ;;  %v1188_v34 = vrot.slane %v1126_v4, %v3518_v46 }
 0x2db   : > { %v1164_v9 = vrot.slane %v1108_v53, %v3518_v46 }
 0x2dd   : > { %v1203_v39 = vsel %vm921_vm8, %v1164_v9, %v1202_v55  ;;  %v1132_v31 = vpop.permute.xlu0 %1131 }
 0x2de   : > { %v1111_v61 = vpop.permute.xlu1 %1110  ;;  %v1213_v25 = vsel %vm932_vm9, %v1203_v39, 0.0  ;;  %v1196_v37 = vrot.slane %v1132_v31, %v3518_v46 }
 0x2df   : > { %1214 = vadd.xlane.f32.xlu1 %v1213_v25  ;;  %v1168_v63 = vrot.slane %v1111_v61, %v3518_v46 }
 0x2e1   : > { %v1204_v12 = vsel %vm909_vm2, %v1172_v50, %v1168_v63 }
 0x2e2   : > { %v1117_v1 = vpop.permute.xlu1 %1116 }
 0x2e3   : > { %v1176_v11 = vrot.slane %v1117_v1, %v3518_v46 }
 0x2e5   : > { %v1205_v17 = vsel %vm911_vm3, %v1176_v11, %v1204_v12 }
 0x2e6   : > { %v1123_v28 = vpop.permute.xlu1 %1122  ;;  %v1206_v29 = vsel %vm913_vm4, %v1180_v27, %v1205_v17 }
 0x2e7   : > { %v1184_v51 = vrot.slane %v1123_v28, %v3518_v46 }
 0x2e9   : > { %v1207_v33 = vsel %vm915_vm5, %v1184_v51, %v1206_v29 }
 0x2ea   : > { %v1129_v56 = vpop.permute.xlu1 %1128  ;;  %v1208_v38 = vsel %vm917_vm6, %v1188_v34, %v1207_v33 }
 0x2eb   : > { %v1192_v36 = vrot.slane %v1129_v56, %v3518_v46 }
 0x2ed   : > { %v1209_v62 = vsel %vm919_vm7, %v1192_v36, %v1208_v38 }
 0x2ee   : > { %v1210_v41 = vsel %vm921_vm8, %v1196_v37, %v1209_v62  ;;  %v3109_v62 = vld [vmem:[%s3363_s8 + $0x20] sm:$0xff] }
 0x2ef   : > { %v1216_v42 = vsel %vm932_vm9, %v1210_v41, 0.0 }
 0x2f0   : > { %1217 = vadd.xlane.f32.xlu0 %v1216_v42 }
 0x368   : > { %v1215_v18 = vpop.xlane.xlu1 %1214 }
 0x369   : > { %3105 = vrcp.f32 %v1215_v18 }
 0x376   : > { %v3106_v45 = vpop.eup %3105 }
 0x377   : > { %v1230_v47 = vrot.slane %v3106_v45, %v3614_v59  ;;  %v1226_v22 = vrot.slane %v3106_v45, %v3447_v32  ;;  %v1234_v2 = vrot.slane %v3106_v45, %v3617_v44  ;;  %v1238_v14 = vrot.slane %v3106_v45, %v3620_v60 }
 0x378   : > { %v1246_v57 = vrot.slane %v3106_v45, %v3633_v16  ;;  %v1250_v25 = vrot.slane %v3106_v45, %v3638_v49  ;;  %v1254_v63 = vrot.slane %v3106_v45, %v3643_v23 }
 0x379   : > { %v1218_v53 = vpop.xlane.xlu0 %1217  ;;  %v1304_v54 = vmul.f32 %v3656_v40, %v1230_v47  ;;  %v1303_v9 = vmul.f32 %v3652_v24, %v1226_v22  ;;  %v1305_v55 = vmul.f32 %v3664_v30, %v1234_v2  ;;  %v1306_v40 = vmul.f32 %v3670_v58, %v1238_v14  ;;  %v3110_v47 = vld [vmem:[%s3363_s8 + $0x28] sm:$0xff] }
 0x37a   : > { %3107 = vrcp.f32 %v1218_v53  ;;  %v1242_v24 = vrot.slane %v3106_v45, %v3628_v8  ;;  %v1308_v61 = vmul.f32 %v3678_v13, %v1246_v57  ;;  %v1309_v30 = vmul.f32 %v3686_v26, %v1250_v25 }
 0x37b   : > { %1339 = vperm.xlu1 %3070, %v1304_v54   ;;  %1336 = vperm.xlu0 %3069, %v1303_v9   ;;  %v1310_v58 = vmul.f32 %v3693_v35, %v1254_v63 }
 0x37c   : > { %v1307_v39 = vmul.f32 %v3675_v0, %v1242_v24 }
 0x37f   : > { %1342 = vperm.xlu1 %3070, %v1305_v55   ;;  %1345 = vperm.xlu0 %3069, %v1306_v40   ;;  %v3111_v55 = vld [vmem:[%s3363_s8 + $0x30] sm:$0xff] }
 0x383   : > { %1348 = vperm.xlu1 %3070, %v1307_v39   ;;  %1351 = vperm.xlu0 %3069, %v1308_v61   ;;  %v3112_v39 = vld [vmem:[%s3363_s8 + $0x60] sm:$0xff] }
 0x387   : > { %v3108_v50 = vpop.eup %3107  ;;  %1354 = vperm.xlu1 %3070, %v1309_v30   ;;  %1357 = vperm.xlu0 %3069, %v1310_v58   ;;  %v3113_v30 = vld [vmem:[%s3363_s8 + $0x38] sm:$0xff] }
 0x388   : > { %v1262_v1 = vrot.slane %v3108_v50, %v3614_v59  ;;  %v1258_v4 = vrot.slane %v3108_v50, %v3447_v32  ;;  %v1270_v11 = vrot.slane %v3108_v50, %v3620_v60  ;;  %v1266_v12 = vrot.slane %v3108_v50, %v3617_v44 }
 0x389   : > { %v1278_v17 = vrot.slane %v3108_v50, %v3633_v16  ;;  %v1274_v59 = vrot.slane %v3108_v50, %v3628_v8  ;;  %v1286_v60 = vrot.slane %v3108_v50, %v3643_v23  ;;  %v1282_v44 = vrot.slane %v3108_v50, %v3638_v49 }
 0x38a   : > { %v1312_v0 = vmul.f32 %v3682_v10, %v1262_v1  ;;  %v1311_v13 = vmul.f32 %v3699_v48, %v1258_v4  ;;  %v1314_v26 = vmul.f32 %v3689_v15, %v1270_v11  ;;  %v1313_v35 = vmul.f32 %v3705_v20, %v1266_v12  ;;  %v3115_v12 = vld [vmem:[%s3363_s8 + $0x40] sm:$0xff] }
 0x38b   : > { %v1316_v32 = vmul.f32 %v3695_v19, %v1278_v17  ;;  %v1315_v10 = vmul.f32 %v3708_v21, %v1274_v59  ;;  %v1318_v15 = vmul.f32 %v3701_v43, %v1286_v60  ;;  %v1317_v48 = vmul.f32 %v3711_v52, %v1282_v44  ;;  %v3118_v17 = vld [vmem:[%s3363_s8 + $0x68] sm:$0xff]  ;;  %v3119_v59 = vld [vmem:[%s3363_s8 + $0x78] sm:$0xff] }
 0x38c   : > { %1363 = vperm.xlu0 %3069, %v1312_v0   ;;  %1360 = vperm.xlu1 %3070, %v1311_v13   ;;  %v3114_v0 = vld [vmem:[%s3363_s8 + $0x70] sm:$0xff] }
 0x390   : > { %1369 = vperm.xlu0 %3069, %v1314_v26   ;;  %1366 = vperm.xlu1 %3070, %v1313_v35   ;;  %v3117_v35 = vld [vmem:[%s3363_s8 + $0x58] sm:$0xff] }
 0x394   : > { %1375 = vperm.xlu0 %3069, %v1316_v32   ;;  %1372 = vperm.xlu1 %3070, %v1315_v10  }
 0x398   : > { %1381 = vperm.xlu0 %3069, %v1318_v15   ;;  %1378 = vperm.xlu1 %3070, %v1317_v48  }
 0x3f6   : > { %v1340_v16 = vpop.permute.xlu1 %1339  ;;  %v1337_v8 = vpop.permute.xlu0 %1336 }
 0x3f7   : > { %v1386_v20 = vrot.slane %v1337_v8, %v3518_v46  ;;  %v1390_v19 = vrot.slane %v1340_v16, %v3518_v46 }
 0x3f9   : > { %2938 = vmatmul.mubr.msk.f32.vlgmr.msra.gmra.mxu1 %vm932_vm9, %v1386_v20  ;;  %v1447_v21 = vsel %vm909_vm2, %v1390_v19, %v1386_v20 }
 0x3fa   : > { %2941 = vmatpush3.msra.mxu1 %v3387_v5  ;;  %v1343_v23 = vpop.permute.xlu1 %1342  ;;  %v1346_v49 = vpop.permute.xlu0 %1345  ;;  %2942 = vmatprep.mubr.msk.f32.mxu1 %vm3220_vm10, %v3219_v3 }
 0x3fb   : > { %v1394_v43 = vrot.slane %v1343_v23, %v3518_v46  ;;  %2945 = vmatprep.subr.mxu1 %v3219_v3  ;;  %v1398_v52 = vrot.slane %v1346_v49, %v3518_v46 }
 0x3fd   : > { %v1448_v27 = vsel %vm911_vm3, %v1394_v43, %v1447_v21  ;;  %2943 = vmatmul.mubr.msk.f32.vlgmr.msra.gmra.mxu1 %vm932_vm9, %v1390_v19 }
 0x3fe   : > { %2946 = vmatpush3.msra.mxu1 %v3390_v6  ;;  %v1349_v5 = vpop.permute.xlu1 %1348  ;;  %v1352_v28 = vpop.permute.xlu0 %1351  ;;  %2947 = vmatprep.mubr.msk.f32.mxu1 %vm3220_vm10, %v3219_v3  ;;  %v1449_v29 = vsel %vm913_vm4, %v1398_v52, %v1448_v27 }
 0x3ff   : > { %v1402_v51 = vrot.slane %v1349_v5, %v3518_v46  ;;  %2950 = vmatprep.subr.mxu1 %v3219_v3  ;;  %v1406_v31 = vrot.slane %v1352_v28, %v3518_v46 }
 0x401   : > { %v1450_v33 = vsel %vm915_vm5, %v1402_v51, %v1449_v29  ;;  %2948 = vmatmul.mubr.msk.f32.vlgmr.msra.gmra.mxu1 %vm932_vm9, %v1394_v43 }
 0x402   : > { %2951 = vmatpush3.msra.mxu1 %v3397_v7  ;;  %v1355_v6 = vpop.permute.xlu1 %1354  ;;  %v1358_v34 = vpop.permute.xlu0 %1357  ;;  %2952 = vmatprep.mubr.msk.f32.mxu1 %vm3220_vm10, %v3219_v3  ;;  %v1451_v7 = vsel %vm917_vm6, %v1406_v31, %v1450_v33 }
 0x403   : > { %v1410_v56 = vrot.slane %v1355_v6, %v3518_v46  ;;  %v1414_v36 = vrot.slane %v1358_v34, %v3518_v46  ;;  %2955 = vmatprep.subr.mxu1 %v3219_v3 }
 0x405   : > { %v1452_v37 = vsel %vm919_vm7, %v1410_v56, %v1451_v7  ;;  %2953 = vmatmul.mubr.msk.f32.vlgmr.msra.gmra.mxu1 %vm932_vm9, %v1398_v52 }
 0x406   : > { %v1453_v38 = vsel %vm921_vm8, %v1414_v36, %v1452_v37  ;;  %2956 = vmatpush3.msra.mxu1 %v3109_v62  ;;  %2957 = vmatprep.mubr.msk.f32.mxu1 %vm3220_vm10, %v3219_v3 }
 0x407   : > { %1463 = vst.msk [vmem:[%s3820_s9] sm:$0xff] %vm932_vm9, %v1453_v38  ;;  %v1361_v41 = vpop.permute.xlu1 %1360  ;;  %v1364_v42 = vpop.permute.xlu0 %1363  ;;  %2960 = vmatprep.subr.mxu1 %v3219_v3 }
 0x408   : > { %v1418_v18 = vrot.slane %v1361_v41, %v3518_v46  ;;  %v1422_v45 = vrot.slane %v1364_v42, %v3518_v46 }
 0x409   : > { %2958 = vmatmul.mubr.msk.f32.vlgmr.msra.gmra.mxu1 %vm932_vm9, %v1402_v51 }
 0x40a   : > { %2961 = vmatpush3.msra.mxu1 %v3110_v47  ;;  %2962 = vmatprep.mubr.msk.f32.mxu1 %vm3220_vm10, %v3219_v3  ;;  %v1454_v9 = vsel %vm909_vm2, %v1422_v45, %v1418_v18 }
 0x40b   : > { %v1367_v22 = vpop.permute.xlu1 %1366  ;;  %v1370_v53 = vpop.permute.xlu0 %1369  ;;  %2965 = vmatprep.subr.mxu1 %v3219_v3 }
 0x40c   : > { %v1426_v54 = vrot.slane %v1367_v22, %v3518_v46  ;;  %v1430_v2 = vrot.slane %v1370_v53, %v3518_v46 }
 0x40d   : > { %2963 = vmatmul.mubr.msk.f32.vlgmr.msra.gmra.mxu1 %vm932_vm9, %v1406_v31 }
 0x40e   : > { %v1455_v14 = vsel %vm911_vm3, %v1426_v54, %v1454_v9  ;;  %2966 = vmatpush3.msra.mxu1 %v3111_v55  ;;  %2988 = vmatmul.mubr.msk.f32.vlgmr.msra.gmra.mxu0 %vm932_vm9, %v1426_v54 }
 0x40f   : > { %v1373_v40 = vpop.permute.xlu1 %1372  ;;  %v1376_v24 = vpop.permute.xlu0 %1375  ;;  %2967 = vmatprep.mubr.msk.f32.mxu1 %vm3220_vm10, %v3219_v3  ;;  %2970 = vmatprep.subr.mxu1 %v3219_v3  ;;  %v1456_v61 = vsel %vm913_vm4, %v1430_v2, %v1455_v14 }
 0x410   : > { %v1434_v57 = vrot.slane %v1373_v40, %v3518_v46  ;;  %2996 = vmatpush3.msra.mxu0 %v3112_v39  ;;  %2997 = vmatprep.mubr.msk.f32.mxu0 %vm3220_vm10, %v3219_v3  ;;  %v1438_v25 = vrot.slane %v1376_v24, %v3518_v46 }
 0x411   : > { %2968 = vmatmul.mubr.msk.f32.vlgmr.msra.gmra.mxu1 %vm932_vm9, %v1410_v56  ;;  %3005 = vmatprep.subr.mxu0 %v3219_v3 }
 0x412   : > { %v1457_v63 = vsel %vm915_vm5, %v1434_v57, %v1456_v61  ;;  %2971 = vmatpush3.msra.mxu1 %v3113_v30  ;;  %2998 = vmatmul.mubr.msk.f32.vlgmr.msra.gmra.mxu0 %vm932_vm9, %v1434_v57 }
 0x413   : > { %v1379_v58 = vpop.permute.xlu1 %1378  ;;  %v1382_v50 = vpop.permute.xlu0 %1381  ;;  %2972 = vmatprep.mubr.msk.f32.mxu1 %vm3220_vm10, %v3219_v3  ;;  %2975 = vmatprep.subr.mxu1 %v3219_v3  ;;  %v1458_v13 = vsel %vm917_vm6, %v1438_v25, %v1457_v63 }
 0x414   : > { %v1442_v1 = vrot.slane %v1379_v58, %v3518_v46  ;;  %v1446_v4 = vrot.slane %v1382_v50, %v3518_v46  ;;  %3006 = vmatpush3.msra.mxu0 %v3114_v0  ;;  %3007 = vmatprep.mubr.msk.f32.mxu0 %vm3220_vm10, %v3219_v3  ;;  %v3116_v46 = vld [vmem:[%s3363_s8 + $0x48] sm:$0xff]  ;;  %s2806_s8 = sshll.u32 %s3359_s27, 4 }
 0x415   : > { %2973 = vmatmul.mubr.msk.f32.vlgmr.msra.gmra.mxu1 %vm932_vm9, %v1414_v36  ;;  %s287_s13 = scalar_lea.vmem [#allocation6], %s2806_s8 }
 0x416   : > { %v1459_v11 = vsel %vm919_vm7, %v1442_v1, %v1458_v13  ;;  %2976 = vmatpush3.msra.mxu1 %v3115_v12  ;;  %3008 = vmatmul.mubr.msk.f32.vlgmr.msra.gmra.mxu0 %vm932_vm9, %v1442_v1  ;;  %s2684_s12 = sshll.u32 %s287_s13, 4  ;;  %s3919_s12 = int_to_ptr.vmem [resolvable:$true] %s2684_s12 }
 0x417   : > { %v1460_v26 = vsel %vm921_vm8, %v1446_v4, %v1459_v11  ;;  %2977 = vmatprep.mubr.msk.f32.mxu1 %vm3220_vm10, %v3219_v3  ;;  %2980 = vmatprep.subr.mxu1 %v3219_v3  ;;  %s3148_s22 = scalar_lea.vmem %s3919_s12, 256  ;;  %p3155_p7 = scmp.lt.s32.totalorder %s3919_s12, %s3153_s30 }
 0x418   : > { %1464 = vst.msk [vmem:[%s3820_s9 + $0x8] sm:$0xff] %vm932_vm9, %v1460_v26  ;;  %p3149_p12 = scmp.ne.s32.totalorder %s3919_s12, %s3148_s22  ;;  %p3156_p8 = scmp.lt.s32.totalorder %s3154_s17, %s3148_s22 }
 0x419   : > { %2978 = vmatmul.mubr.msk.f32.vlgmr.msra.gmra.mxu1 %vm932_vm9, %v1418_v18 }
 0x41a   : > { %2981 = vmatpush3.msra.mxu1 %v3116_v46  ;;  %2982 = vmatprep.mubr.msk.f32.mxu1 %vm3220_vm10, %v3219_v3  ;;  %p3150_p4 = pnand %p3149_p12, %p3980_p13  ;;  %p3157_p10 = por %p3156_p8, %p3155_p7 }
 0x41b   : > { %2990 = vmatprep.subr.mxu1 %v3219_v3 }
 0x41c   : > { %p3151_p5 = pneg %p3150_p4 }
 0x41d   : > { %2983 = vmatmul.mubr.msk.f32.vlgmr.msra.gmra.mxu1 %vm932_vm9, %v1422_v45 }
 0x41e   : > { %2991 = vmatpush3.msra.mxu1 %v3117_v35  ;;  %2992 = vmatprep.mubr.msk.f32.mxu1 %vm3220_vm10, %v3219_v3  ;;  %p3158_p0 = pnand %p3157_p10, %p3151_p5 }
 0x41f   : > { %3000 = vmatprep.subr.mxu1 %v3219_v3 }
 0x421   : > { %2993 = vmatmul.mubr.msk.f32.vlgmr.msra.gmra.mxu1 %vm932_vm9, %v1430_v2 }
 0x422   : > { %3001 = vmatpush3.msra.mxu1 %v3118_v17  ;;  %3002 = vmatprep.mubr.msk.f32.mxu1 %vm3220_vm10, %v3219_v3 }
 0x423   : > { %3010 = vmatprep.subr.mxu1 %v3219_v3 }
 0x425   : > { %3003 = vmatmul.mubr.msk.f32.vlgmr.msra.gmra.mxu1 %vm932_vm9, %v1438_v25 }
 0x426   : > { %3011 = vmatpush3.msra.mxu1 %v3119_v59  ;;  %3012 = vmatprep.mubr.msk.f32.mxu1 %vm3220_vm10, %v3219_v3 }
 0x429   : > { %3013 = vmatmul.mubr.msk.f32.vlgmr.msra.gmra.mxu1 %vm932_vm9, %v1446_v4 }
 0x4b9   : > { %v1533_v32 = vpop.f32.mrf.mxu1 }
 0x4bb   : > { %v2939_v10 = vpop.f32.mrf.mxu1 }
 0x4bd   : > { %v1605_v60 = vpop.f32.mrf.mxu1 }
 0x4be   : > { %v2633_v49 = vrot.slane %v1605_v60, 7 }
 0x4bf   : > { %v2944_v44 = vpop.f32.mrf.mxu1 }
 0x4c0   : > { %v2634_v51 = vsel %vm909_vm2, %v2633_v49, %v1533_v32 }
 0x4c1   : > { %v1677_v15 = vpop.f32.mrf.mxu1 }
 0x4c2   : > { %v2635_v21 = vrot.slane %v1677_v15, 6 }
 0x4c3   : > { %v2949_v48 = vpop.f32.mrf.mxu1 }
 0x4c4   : > { %v2636_v33 = vsel %vm911_vm3, %v2635_v21, %v2634_v51 }
 0x4c5   : > { %v1749_v16 = vpop.f32.mrf.mxu1 }
 0x4c6   : > { %v2637_v27 = vrot.slane %v1749_v16, 5 }
 0x4c7   : > { %v2954_v8 = vpop.f32.mrf.mxu1 }
 0x4c8   : > { %v2638_v56 = vsel %vm913_vm4, %v2637_v27, %v2636_v33 }
 0x4c9   : > { %v1821_v20 = vpop.f32.mrf.mxu1 }
 0x4ca   : > { %v2639_v5 = vrot.slane %v1821_v20, 4 }
 0x4cb   : > { %v2959_v19 = vpop.f32.mrf.mxu1 }
 0x4cc   : > { %v2640_v7 = vsel %vm915_vm5, %v2639_v5, %v2638_v56 }
 0x4cd   : > { %v1893_v23 = vpop.f32.mrf.mxu1 }
 0x4ce   : > { %v2253_v43 = vpop.f32.mrf.mxu0  ;;  %v2641_v29 = vrot.slane %v1893_v23, 3 }
 0x4cf   : > { %v2964_v52 = vpop.f32.mrf.mxu1  ;;  %v2649_v55 = vrot.slane %v2253_v43, 6 }
 0x4d0   : > { %v2989_v3 = vpop.f32.mrf.mxu0  ;;  %v2642_v38 = vsel %vm917_vm6, %v2641_v29, %v2640_v7 }
 0x4d1   : > { %v1965_v28 = vpop.f32.mrf.mxu1 }
 0x4d2   : > { %v2397_v31 = vpop.f32.mrf.mxu0  ;;  %v2643_v6 = vrot.slane %v1965_v28, 2 }
 0x4d3   : > { %v2969_v34 = vpop.f32.mrf.mxu1  ;;  %v2653_v25 = vrot.slane %v2397_v31, 4 }
 0x4d4   : > { %v2999_v36 = vpop.f32.mrf.mxu0  ;;  %v2644_v42 = vsel %vm919_vm7, %v2643_v6, %v2642_v38 }
 0x4d5   : > { %v2037_v37 = vpop.f32.mrf.mxu1 }
 0x4d6   : > { %v2645_v62 = vrot.slane %v2037_v37, 1  ;;  %v2541_v41 = vpop.f32.mrf.mxu0 }
 0x4d7   : > { %v2974_v18 = vpop.f32.mrf.mxu1  ;;  %v2657_v4 = vrot.slane %v2541_v41, 2 }
 0x4d8   : > { %v2646_v45 = vsel %vm921_vm8, %v2645_v62, %v2644_v42  ;;  %v3009_v47 = vpop.f32.mrf.mxu0 }
 0x4d9   : > { %2663 = vst.msk [vmem:[%s287_s13] sm:$0xff] %vm329_vm0, %v2646_v45  ;;  %v2109_v22 = vpop.f32.mrf.mxu1 }
 0x4db   : > { %v2979_v53 = vpop.f32.mrf.mxu1 }
 0x4dd   : > { %v2181_v54 = vpop.f32.mrf.mxu1 }
 0x4de   : > { %v2647_v9 = vrot.slane %v2181_v54, 7 }
 0x4df   : > { %v2984_v2 = vpop.f32.mrf.mxu1 }
 0x4e0   : > { %v2648_v14 = vsel %vm909_vm2, %v2647_v9, %v2109_v22 }
 0x4e1   : > { %v2325_v40 = vpop.f32.mrf.mxu1  ;;  %v2650_v57 = vsel %vm911_vm3, %v2649_v55, %v2648_v14 }
 0x4e2   : > { %v2651_v24 = vrot.slane %v2325_v40, 5 }
 0x4e3   : > { %v2994_v39 = vpop.f32.mrf.mxu1 }
 0x4e4   : > { %v2652_v61 = vsel %vm913_vm4, %v2651_v24, %v2650_v57 }
 0x4e5   : > { %v2469_v63 = vpop.f32.mrf.mxu1  ;;  %v2654_v58 = vsel %vm915_vm5, %v2653_v25, %v2652_v61 }
 0x4e6   : > { %v2655_v30 = vrot.slane %v2469_v63, 3 }
 0x4e7   : > { %v3004_v50 = vpop.f32.mrf.mxu1 }
 0x4e8   : > { %v2656_v1 = vsel %vm917_vm6, %v2655_v30, %v2654_v58 }
 0x4e9   : > { %v2613_v0 = vpop.f32.mrf.mxu1  ;;  %v2658_v11 = vsel %vm919_vm7, %v2657_v4, %v2656_v1 }
 0x4ea   : > { %v2659_v13 = vrot.slane %v2613_v0, 1 }
 0x4eb   : > { %v3014_v12 = vpop.f32.mrf.mxu1 }
 0x4ec   : > { %v2660_v26 = vsel %vm921_vm8, %v2659_v13, %v2658_v11 }
 0x4ed   : > { %2664 = vst.msk [vmem:[%s287_s13 + $0x8] sm:$0xff] %vm329_vm0, %v2660_v26 }
 0x4ee   : > { %3161 = shalt.err (!%p3158_p0)
}
 0x4ef   : > { %s3162_s19 = scalar_lea.hbm %s3917_s18, 256  ;;  %s3166_s9 = scalar_lea.hbm %s3970_s5, 512 }
 0x4f0   : > { %p3163_p2 = scmp.ne.s32.totalorder %s3917_s18, %s3162_s19  ;;  %p3167_p3 = scmp.lt.s32.totalorder %s3917_s18, %s3970_s5 }
 0x4f1   : > { %p3168_p6 = scmp.lt.s32.totalorder %s3166_s9, %s3162_s19 }
 0x4f2   : > { %p3164_p9 = pnand %p3163_p2, %p3980_p13 }
 0x4f3   : > { %p3169_p11 = por %p3168_p6, %p3167_p3 }
 0x4f4   : > { %p3165_p1 = pneg %p3164_p9 }
 0x4f6   : > { %p3170_p12 = pnand %p3169_p11, %p3165_p1 }
 0x4f8   : > { %3173 = shalt.err (!%p3170_p12)
}
 0x4f9   : > { %s3222_s14 = smov 128   ;;  %s3223_s15 = smov 8  }
 0x4fa   : > { %3017 = dma.vmem_to_hbm [thread:$0]  (%p3980_p13), %s3919_s12, 256, %s3917_s18, %s2666_s4, %s3222_s14, %s3222_s14, %s3223_s15  }
 0x4fb PF: > { %s2703_s16 = sand.u32 1, %s3200_s23   ;;  %p3981_p4 = scmp.ne.s32.totalorder %s3977_s11, 0 }
 0x4fc   : > { %p3982_p5 = scmp.ge.s32.totalorder %s3212_s26, 2  ;;  %s2704_s22 = scalar_lea.sflag [#allocation5], %s2703_s16 }
 0x4fe   : > { %p3024_p7 = pnand %p3982_p5, %p3981_p4 }
 0x500   : > { %p3025_p8 = pneg %p3024_p7 }
 0x502   : > { %3195 = dma.done.wait (%p3025_p8), %s2704_s22, 256  }
 0x503   : > { %3197 = vsyncadd (%p3025_p8), %s2704_s22, 4294967040  ;;  %p21_p10 = scmp.ge.s32.totalorder %s3287_s28, 4   ;;  %s3983_s23 = smov %s3204_s24 }
 0x504   : > { %s3984_s24 = smov %s3208_s25  ;;  %s3985_s25 = smov %s3299_s7 }
 0x505   : > { %s3986_s26 = smov %s3287_s28  ;;  %23 = sbr.rel (!%p21_p10) target bundleno = 7 (0x7), region = 100 }
 0x50a   :  { %2717 = vsyncpa [#allocation4], 1 }
 0x50b   :  { %2719 = vsyncpa [#allocation4 + $0x1], 1 }
 0x50c   :  { %2720 = vsyncpa [#allocation5], 1 }
 0x50d   :  { %2722 = vsyncpa [#allocation5 + $0x1], 1 }

</bundles_post_ra>
